<compile_context>
chip_gen: v7x
topology: tpu7x:2x2x1
jax: 0.10.0
libtpu: 0.0.40
codegen_flags: <defaults>
</compile_context>

<pallas_src>
import jax
import jax.numpy as jnp
from jax.experimental import pallas as pl
from jax.experimental.pallas import tpu as pltpu

# ---- model hyperparameters (from the PyTorch module) -----------------------
CONV1_F = 128
CONV2_F = 64
EMB_DIM = 256
HIDDEN = 128
NUM_CLASSES = 10
VOCAB = 5000

PAD_OUT = 128          # lane-dense padded logits width (>= NUM_CLASSES)


def _round_up(x, m):
    return ((x + m - 1) // m) * m


def textcnn_kernel(x_ref, w12_ref, b12_ref, wf1_ref, bf1_ref,
                   wf2_ref, bf2_ref, o_ref):
    # x_ref: (Bt, L, EMB_DIM) bf16 embedded tokens for a batch tile
    Bt, L, E = x_ref.shape

    # Folded conv1+conv2 (both kernel_size=1): one per-token matmul E -> CONV2_F,
    # run on a (Bt*L, E) slab to fill the MXU M dimension.
    x = x_ref[...].reshape(Bt * L, E)                                   # bf16
    h = jnp.dot(x, w12_ref[...],
                preferred_element_type=jnp.float32) + b12_ref[...]     # (Bt*L, 64) f32

    # AdaptiveMaxPool1d(1): global max over the sequence axis per sequence.
    pooled = jnp.max(h.reshape(Bt, L, CONV2_F), axis=1)                 # (Bt, 64)

    # fc1 -> dropout(eval: identity) -> relu -> fc2 (lane-padded to 128 outputs)
    # TODO(synk): Dropout is identity in eval/inference; training-mode RNG mask not implemented.
    f1 = jnp.dot(pooled, wf1_ref[...],
                 preferred_element_type=jnp.float32) + bf1_ref[...]     # (Bt, 128)
    f1 = jnp.maximum(f1, 0.0)
    out = jnp.dot(f1, wf2_ref[...],
                  preferred_element_type=jnp.float32) + bf2_ref[...]    # (Bt, PAD_OUT)

    o_ref[...] = out.astype(o_ref.dtype)


def textcnn_forward(tokens, params, block_b=64):
    """tokens: int32 (B, L); returns logits (B, NUM_CLASSES)."""
    emb_tbl, w1, b1, w2, b2, wf1, bf1, wf2, bf2 = params
    B, L = tokens.shape

    # --- fold conv1 into conv2 (exact: both are k=1 linear maps, no activation) ---
    w12 = jnp.dot(w1, w2)                       # (EMB_DIM, CONV2_F) f32
    b12 = jnp.dot(b1, w2) + b2                  # (1, CONV2_F)       f32

    # --- lane-dense fc2: pad output width 10 -> 128 with zeros ---
    wf2_p = jnp.pad(wf2, ((0, 0), (0, PAD_OUT - NUM_CLASSES)))
    bf2_p = jnp.pad(bf2, ((0, 0), (0, PAD_OUT - NUM_CLASSES)))

    # --- batch tiling: pad B up to a multiple of the batch tile ---
    Bt = min(block_b, _round_up(B, 8))          # multiple of 8 (sublane aligned)
    B_pad = _round_up(B, Bt)
    if B_pad != B:
        tokens = jnp.pad(tokens, ((0, B_pad - B), (0, 0)))   # pad with token id 0

    # Embedding gather (data-dependent; plain JAX) -> channels-last, bf16 stream.
    x_emb = jnp.take(emb_tbl, tokens, axis=0).astype(jnp.bfloat16)      # (B_pad, L, E)
    w12_bf = w12.astype(jnp.bfloat16)

    grid = (B_pad // Bt,)
    out = pl.pallas_call(
        textcnn_kernel,
        out_shape=jax.ShapeDtypeStruct((B_pad, PAD_OUT), jnp.float32),
        grid_spec=pltpu.PrefetchScalarGridSpec(
            num_scalar_prefetch=0,
            grid=grid,
            in_specs=[
                pl.BlockSpec((Bt, L, EMB_DIM), lambda i: (i, 0, 0)),     # x (batch tile)
                pl.BlockSpec((EMB_DIM, CONV2_F), lambda i: (0, 0)),      # folded W12
                pl.BlockSpec((1, CONV2_F), lambda i: (0, 0)),            # folded b12
                pl.BlockSpec((CONV2_F, HIDDEN), lambda i: (0, 0)),       # wf1
                pl.BlockSpec((1, HIDDEN), lambda i: (0, 0)),             # bf1
                pl.BlockSpec((HIDDEN, PAD_OUT), lambda i: (0, 0)),       # wf2 (padded)
                pl.BlockSpec((1, PAD_OUT), lambda i: (0, 0)),            # bf2 (padded)
            ],
            out_specs=pl.BlockSpec((Bt, PAD_OUT), lambda i: (i, 0)),
        ),
        compiler_params=pltpu.CompilerParams(
            dimension_semantics=("parallel",),
            vmem_limit_bytes=64 << 20),
    )(x_emb, w12_bf, b12, wf1, bf1, wf2_p, bf2_p)

    return out[:B, :NUM_CLASSES]


def init_params(key):
    ks = jax.random.split(key, 9)
    scale = 0.02
    emb_tbl = jax.random.normal(ks[0], (VOCAB + 1, EMB_DIM), jnp.float32) * scale
    # Conv1d weights in PyTorch are (out, in, k=1); stored transposed as (in, out).
    w1 = jax.random.normal(ks[1], (EMB_DIM, CONV1_F), jnp.float32) * scale
    b1 = jax.random.normal(ks[2], (1, CONV1_F), jnp.float32) * scale
    w2 = jax.random.normal(ks[3], (CONV1_F, CONV2_F), jnp.float32) * scale
    b2 = jax.random.normal(ks[4], (1, CONV2_F), jnp.float32) * scale
    # Linear weights in PyTorch are (out, in); stored transposed as (in, out).
    wf1 = jax.random.normal(ks[5], (CONV2_F, HIDDEN), jnp.float32) * scale
    bf1 = jax.random.normal(ks[6], (1, HIDDEN), jnp.float32) * scale
    wf2 = jax.random.normal(ks[7], (HIDDEN, NUM_CLASSES), jnp.float32) * scale
    bf2 = jax.random.normal(ks[8], (1, NUM_CLASSES), jnp.float32) * scale
    return (emb_tbl, w1, b1, w2, b2, wf1, bf1, wf2, bf2)


def reference_forward(tokens, params):
    """Pure-JAX f32 reference mirroring the PyTorch forward (eval mode), unfused."""
    emb_tbl, w1, b1, w2, b2, wf1, bf1, wf2, bf2 = params
    x = jnp.take(emb_tbl, tokens, axis=0)                 # (B, L, E)
    h1 = x @ w1 + b1                                      # k=1 conv1
    h2 = h1 @ w2 + b2                                     # k=1 conv2
    pooled = jnp.max(h2, axis=1)                          # global max pool over L
    f1 = pooled @ wf1 + bf1
    f1 = jnp.maximum(f1, 0.0)                             # dropout(eval)=id, relu
    return f1 @ wf2 + bf2


if __name__ == "__main__":
    key = jax.random.PRNGKey(0)
    pkey, tkey = jax.random.split(key)
    params = init_params(pkey)

    B, L = 2, 8
    tokens = jax.random.randint(tkey, (B, L), 0, VOCAB + 1, dtype=jnp.int32)

    out = textcnn_forward(tokens, params)
    out = jax.block_until_ready(out)

    ref = reference_forward(tokens, params)
    assert out.shape == (B, NUM_CLASSES)
    # bf16 activation/weight stream + f32 accumulation -> small rounding delta vs f32 reference
    assert jnp.allclose(out, ref, atol=2e-3, rtol=2e-2), "mismatch vs reference"

    print("KERNEL_OK")
</pallas_src>

<mosaic_0001>
module attributes {stable_mosaic.version = 11 : i64} {
  func.func @textcnn_kernel(%arg0: i32, %arg1: memref<8x8x256xbf16, #tpu.memory_space<vmem>>, %arg2: memref<256x64xbf16, #tpu.memory_space<vmem>>, %arg3: memref<1x64xf32, #tpu.memory_space<vmem>>, %arg4: memref<64x128xf32, #tpu.memory_space<vmem>>, %arg5: memref<1x128xf32, #tpu.memory_space<vmem>>, %arg6: memref<128x128xf32, #tpu.memory_space<vmem>>, %arg7: memref<1x128xf32, #tpu.memory_space<vmem>>, %arg8: memref<8x128xf32, #tpu.memory_space<vmem>>) attributes {dimension_semantics = [#tpu.dimension_semantics<parallel>], iteration_bounds = array<i64: 1>, scalar_prefetch = 0 : i64, scratch_operands = 0 : i64, tpu.core_type = #tpu.core_type<tc>, window_params = [{transform_indices = @transform_0, window_bounds = array<i64: 8, 8, 256>}, {pipeline_mode = #tpu.pipeline_mode<synchronous>, transform_indices = @transform_1, window_bounds = array<i64: 256, 64>}, {pipeline_mode = #tpu.pipeline_mode<synchronous>, transform_indices = @transform_2, window_bounds = array<i64: 1, 64>}, {pipeline_mode = #tpu.pipeline_mode<synchronous>, transform_indices = @transform_3, window_bounds = array<i64: 64, 128>}, {pipeline_mode = #tpu.pipeline_mode<synchronous>, transform_indices = @transform_4, window_bounds = array<i64: 1, 128>}, {pipeline_mode = #tpu.pipeline_mode<synchronous>, transform_indices = @transform_5, window_bounds = array<i64: 128, 128>}, {pipeline_mode = #tpu.pipeline_mode<synchronous>, transform_indices = @transform_6, window_bounds = array<i64: 1, 128>}, {transform_indices = @transform_7, window_bounds = array<i64: 8, 128>}]} {
    %c0 = arith.constant 0 : index
    %c0_0 = arith.constant 0 : index
    %c0_1 = arith.constant 0 : index
    %0 = vector.load %arg1[%c0, %c0_0, %c0_1] : memref<8x8x256xbf16, #tpu.memory_space<vmem>>, vector<8x8x256xbf16>
    %1 = vector.shape_cast %0 : vector<8x8x256xbf16> to vector<64x256xbf16>
    %c0_2 = arith.constant 0 : index
    %c0_3 = arith.constant 0 : index
    %2 = vector.load %arg2[%c0_2, %c0_3] : memref<256x64xbf16, #tpu.memory_space<vmem>>, vector<256x64xbf16>
    %cst = arith.constant dense<0.000000e+00> : vector<64x64xf32>
    %3 = tpu.matmul %1, %2, %cst {dimension_numbers = #tpu.dot_dimension_numbers<[1], [0], [0], [1], [0, 0, 1, 1], [], []>} : vector<64x256xbf16>, vector<256x64xbf16>, vector<64x64xf32> -> vector<64x64xf32>
    %c0_4 = arith.constant 0 : index
    %c0_5 = arith.constant 0 : index
    %4 = vector.load %arg3[%c0_4, %c0_5] : memref<1x64xf32, #tpu.memory_space<vmem>>, vector<1x64xf32>
    %5 = vector.broadcast %4 : vector<1x64xf32> to vector<64x64xf32>
    %6 = arith.addf %3, %5 : vector<64x64xf32>
    %7 = vector.shape_cast %6 : vector<64x64xf32> to vector<8x8x64xf32>
    %cst_6 = arith.constant dense<0xFF800000> : vector<8x64xf32>
    %8 = vector.multi_reduction <maximumf>, %7, %cst_6 [1] : vector<8x8x64xf32> to vector<8x64xf32>
    %c0_7 = arith.constant 0 : index
    %c0_8 = arith.constant 0 : index
    %9 = vector.load %arg4[%c0_7, %c0_8] : memref<64x128xf32, #tpu.memory_space<vmem>>, vector<64x128xf32>
    %cst_9 = arith.constant dense<0.000000e+00> : vector<8x128xf32>
    %10 = tpu.matmul %8, %9, %cst_9 {dimension_numbers = #tpu.dot_dimension_numbers<[1], [0], [0], [1], [0, 0, 1, 1], [], []>} : vector<8x64xf32>, vector<64x128xf32>, vector<8x128xf32> -> vector<8x128xf32>
    %c0_10 = arith.constant 0 : index
    %c0_11 = arith.constant 0 : index
    %11 = vector.load %arg5[%c0_10, %c0_11] : memref<1x128xf32, #tpu.memory_space<vmem>>, vector<1x128xf32>
    %12 = vector.broadcast %11 : vector<1x128xf32> to vector<8x128xf32>
    %13 = arith.addf %10, %12 : vector<8x128xf32>
    %cst_12 = arith.constant 0.000000e+00 : f32
    %14 = vector.broadcast %cst_12 : f32 to vector<8x128xf32>
    %15 = arith.maximumf %13, %14 : vector<8x128xf32>
    %c0_13 = arith.constant 0 : index
    %c0_14 = arith.constant 0 : index
    %16 = vector.load %arg6[%c0_13, %c0_14] : memref<128x128xf32, #tpu.memory_space<vmem>>, vector<128x128xf32>
    %cst_15 = arith.constant dense<0.000000e+00> : vector<8x128xf32>
    %17 = tpu.matmul %15, %16, %cst_15 {dimension_numbers = #tpu.dot_dimension_numbers<[1], [0], [0], [1], [0, 0, 1, 1], [], []>} : vector<8x128xf32>, vector<128x128xf32>, vector<8x128xf32> -> vector<8x128xf32>
    %c0_16 = arith.constant 0 : index
    %c0_17 = arith.constant 0 : index
    %18 = vector.load %arg7[%c0_16, %c0_17] : memref<1x128xf32, #tpu.memory_space<vmem>>, vector<1x128xf32>
    %19 = vector.broadcast %18 : vector<1x128xf32> to vector<8x128xf32>
    %20 = arith.addf %17, %19 : vector<8x128xf32>
    %c0_18 = arith.constant 0 : index
    %c0_19 = arith.constant 0 : index
    %21 = vector.load %arg8[%c0_18, %c0_19] : memref<8x128xf32, #tpu.memory_space<vmem>>, vector<8x128xf32>
    tpu.vector_store %arg8[%c0_18, %c0_19], %20 {strides = array<i32>} : memref<8x128xf32, #tpu.memory_space<vmem>>, vector<8x128xf32>,
    return
  }
  func.func @transform_0(%arg0: i32) -> (i32, i32, i32) {
    %c0_i32 = arith.constant 0 : i32
    %c0_i32_0 = arith.constant 0 : i32
    %c0_i32_1 = arith.constant 0 : i32
    return %arg0, %c0_i32, %c0_i32_0 : i32, i32, i32
  }
  func.func @transform_1(%arg0: i32) -> (i32, i32) {
    %c0_i32 = arith.constant 0 : i32
    %c0_i32_0 = arith.constant 0 : i32
    %c0_i32_1 = arith.constant 0 : i32
    return %c0_i32, %c0_i32_0 : i32, i32
  }
  func.func @transform_2(%arg0: i32) -> (i32, i32) {
    %c0_i32 = arith.constant 0 : i32
    %c0_i32_0 = arith.constant 0 : i32
    %c0_i32_1 = arith.constant 0 : i32
    return %c0_i32, %c0_i32_0 : i32, i32
  }
  func.func @transform_3(%arg0: i32) -> (i32, i32) {
    %c0_i32 = arith.constant 0 : i32
    %c0_i32_0 = arith.constant 0 : i32
    %c0_i32_1 = arith.constant 0 : i32
    return %c0_i32, %c0_i32_0 : i32, i32
  }
  func.func @transform_4(%arg0: i32) -> (i32, i32) {
    %c0_i32 = arith.constant 0 : i32
    %c0_i32_0 = arith.constant 0 : i32
    %c0_i32_1 = arith.constant 0 : i32
    return %c0_i32, %c0_i32_0 : i32, i32
  }
  func.func @transform_5(%arg0: i32) -> (i32, i32) {
    %c0_i32 = arith.constant 0 : i32
    %c0_i32_0 = arith.constant 0 : i32
    %c0_i32_1 = arith.constant 0 : i32
    return %c0_i32, %c0_i32_0 : i32, i32
  }
  func.func @transform_6(%arg0: i32) -> (i32, i32) {
    %c0_i32 = arith.constant 0 : i32
    %c0_i32_0 = arith.constant 0 : i32
    %c0_i32_1 = arith.constant 0 : i32
    return %c0_i32, %c0_i32_0 : i32, i32
  }
  func.func @transform_7(%arg0: i32) -> (i32, i32) {
    %c0_i32 = arith.constant 0 : i32
    %c0_i32_0 = arith.constant 0 : i32
    return %arg0, %c0_i32 : i32, i32
  }
}

</mosaic_0001>

<bundles_post_ra>
// kernel: tpu_custom_call.1
= control target key start
LH: loop header
LB: loop body
LE: loop exit
PB: predicated region body
PF: predicated region fallthrough
CT: control target
= control target key end

     0   :  { %12 = vsyncpa [#allocation3], 0  ;;  %s1252_s0 = inlined_call_operand.hbm [shape: bf16[8,8,256], index: 0, kind: input, shape index: {}]   ;;  %s1253_s1 = inlined_call_operand.hbm [shape: bf16[256,64], index: 1, kind: input, shape index: {}]   ;;  %s1254_s2 = inlined_call_operand.hbm [shape: f32[1,64], index: 2, kind: input, shape index: {}]   ;;  %s1255_s3 = inlined_call_operand.hbm [shape: f32[64,128], index: 3, kind: input, shape index: {}]   ;;  %s1256_s4 = inlined_call_operand.hbm [shape: f32[1,128], index: 4, kind: input, shape index: {}]   ;;  %s1257_s5 = inlined_call_operand.hbm [shape: f32[128,128], index: 5, kind: input, shape index: {}]   ;;  %s1258_s6 = inlined_call_operand.hbm [shape: f32[1,128], index: 6, kind: input, shape index: {}]   ;;  %s1259_s7 = inlined_call_operand.hbm [shape: f32[8,128], index: 7, kind: output, shape index: {}]  }
   0x1   :  { %13 = vsyncpa [#allocation6], 0 }
   0x2   :  { %14 = vsyncpa [#allocation9], 0 }
   0x3   :  { %15 = vsyncpa [#allocation12], 0 }
   0x4   :  { %16 = vsyncpa [#allocation4], 0  ;;  %s1057_s24 = smov [#allocation5]   ;;  %s871_s28 = scalar_lea.hbm %s1253_s1, 2048 }
   0x5   :  { %s34_s25 = sshll.u32 %s1057_s24, 4  ;;  %p872_p0 = scmp.ne.s32.totalorder %s1253_s1, %s871_s28  ;;  %s35_s25 = int_to_ptr.vmem [resolvable:$true] %s34_s25 }
   0x6   :  { %p875_p1 = scmp.lt.u32.totalorder %s871_s28, %s1253_s1 }
   0x8   :  { %p877_p2 = pnand %p875_p1, %p872_p0 }
   0xa   :  { %880 = shalt.err (!%p877_p2)
}
   0xb   :  { %s881_s10 = scalar_lea.vmem %s35_s25, 2048  ;;  %p886_p4 = scmp.lt.s32.totalorder %s35_s25, %s35_s25 }
   0xc   :  { %p882_p3 = scmp.ne.s32.totalorder %s35_s25, %s881_s10  ;;  %p887_p5 = scmp.lt.s32.totalorder %s881_s10, %s881_s10 }
   0xe   :  { %p888_p6 = por %p887_p5, %p886_p4 }
  0x10   :  { %p889_p7 = pnand %p888_p6, %p882_p3 }
  0x12   :  { %892 = shalt.err (!%p889_p7)
}
  0x13   :  { %s1058_s11 = smov 64   ;;  %s1059_s12 = smov 4  }
  0x14   :  { %40 = dma.hbm_to_vmem [thread:$0]  %s1253_s1, 2048, %s35_s25, [#allocation6], %s1058_s11, %s1058_s11, %s1059_s12  }
  0x15   :  { %s1060_s15 = smov [#allocation8]   ;;  %s1061_s17 = smov [#allocation11]  }
  0x16   :  { %s56_s16 = sshll.u32 %s1060_s15, 4  ;;  %s78_s18 = sshll.u32 %s1061_s17, 4  ;;  %s57_s16 = int_to_ptr.vmem [resolvable:$true] %s56_s16  ;;  %s79_s18 = int_to_ptr.vmem [resolvable:$true] %s78_s18 }
  0x17   :  { %s893_s21 = scalar_lea.hbm %s1255_s3, 1024 }
  0x18   :  { %p894_p8 = scmp.ne.s32.totalorder %s1255_s3, %s893_s21  ;;  %p897_p9 = scmp.lt.u32.totalorder %s893_s21, %s1255_s3 }
  0x1a   :  { %p899_p10 = pnand %p897_p9, %p894_p8 }
  0x1c   :  { %902 = shalt.err (!%p899_p10)
}
  0x1d   :  { %s903_s1 = scalar_lea.vmem %s57_s16, 1024  ;;  %p908_p12 = scmp.lt.s32.totalorder %s57_s16, %s57_s16 }
  0x1e   :  { %p904_p11 = scmp.ne.s32.totalorder %s57_s16, %s903_s1  ;;  %p909_p13 = scmp.lt.s32.totalorder %s903_s1, %s903_s1 }
  0x20   :  { %p910_p0 = por %p909_p13, %p908_p12 }
  0x22   :  { %p911_p1 = pnand %p910_p0, %p904_p11 }
  0x24   :  { %914 = shalt.err (!%p911_p1)
}
  0x25   :  { %s1062_s25 = smov 128   ;;  %s1063_s27 = smov 8  }
  0x26   :  { %62 = dma.hbm_to_vmem [thread:$0]  %s1255_s3, 1024, %s57_s16, [#allocation9], %s1062_s25, %s1062_s25, %s1063_s27  }
  0x27   :  { %s915_s9 = scalar_lea.hbm %s1257_s5, 2048 }
  0x28   :  { %p916_p2 = scmp.ne.s32.totalorder %s1257_s5, %s915_s9  ;;  %p919_p3 = scmp.lt.u32.totalorder %s915_s9, %s1257_s5 }
  0x2a   :  { %p921_p4 = pnand %p919_p3, %p916_p2 }
  0x2c   :  { %924 = shalt.err (!%p921_p4)
}
  0x2d   :  { %s925_s14 = scalar_lea.vmem %s79_s18, 2048  ;;  %p930_p6 = scmp.lt.s32.totalorder %s79_s18, %s79_s18 }
  0x2e   :  { %p926_p5 = scmp.ne.s32.totalorder %s79_s18, %s925_s14  ;;  %p931_p7 = scmp.lt.s32.totalorder %s925_s14, %s925_s14 }
  0x30   :  { %p932_p8 = por %p931_p7, %p930_p6 }
  0x32   :  { %p933_p9 = pnand %p932_p8, %p926_p5 }
  0x34   :  { %936 = shalt.err (!%p933_p9)
}
  0x35   :  { %84 = dma.hbm_to_vmem [thread:$0]  %s1257_s5, 2048, %s79_s18, [#allocation12], %s1062_s25, %s1062_s25, %s1063_s27  }
  0x36   :  { %s1064_s16 = smov [#allocation2]   ;;  %s1065_s19 = smov [#allocation7]  }
  0x37   :  { %s22_s17 = sshll.u32 %s1064_s16, 4  ;;  %s47_s20 = sshll.u32 %s1065_s19, 4  ;;  %s23_s17 = int_to_ptr.vmem [resolvable:$true] %s22_s17  ;;  %s48_s20 = int_to_ptr.vmem [resolvable:$true] %s47_s20 }
  0x38   :  { %s937_s23 = scalar_lea.hbm %s1252_s0, 1024 }
  0x39   :  { %p938_p10 = scmp.ne.s32.totalorder %s1252_s0, %s937_s23  ;;  %p941_p11 = scmp.lt.u32.totalorder %s937_s23, %s1252_s0 }
  0x3b   :  { %p943_p12 = pnand %p941_p11, %p938_p10 }
  0x3d   :  { %946 = shalt.err (!%p943_p12)
}
  0x3e   :  { %s947_s5 = scalar_lea.vmem %s23_s17, 1024  ;;  %p952_p0 = scmp.lt.s32.totalorder %s23_s17, %s23_s17 }
  0x3f   :  { %p948_p13 = scmp.ne.s32.totalorder %s23_s17, %s947_s5  ;;  %p953_p1 = scmp.lt.s32.totalorder %s947_s5, %s947_s5 }
  0x41   :  { %p954_p2 = por %p953_p1, %p952_p0 }
  0x43   :  { %p955_p3 = pnand %p954_p2, %p948_p13 }
  0x45   :  { %958 = shalt.err (!%p955_p3)
}
  0x46   :  { %28 = dma.hbm_to_vmem [thread:$0]  %s1252_s0, 1024, %s23_s17, [#allocation3], %s1062_s25, %s1062_s25, %s1063_s27  }
  0x47   :  { %s959_s9 = scalar_lea.hbm %s1254_s2, 16 }
  0x48   :  { %p960_p4 = scmp.ne.s32.totalorder %s1254_s2, %s959_s9  ;;  %p963_p5 = scmp.lt.u32.totalorder %s959_s9, %s1254_s2 }
  0x4a   :  { %p965_p6 = pnand %p963_p5, %p960_p4 }
  0x4c   :  { %968 = shalt.err (!%p965_p6)
}
  0x4d   :  { %s969_s14 = scalar_lea.vmem %s48_s20, 16  ;;  %s973_s3 = scalar_lea.vmem %s48_s20, 32 }
  0x4e   :  { %p970_p7 = scmp.ne.s32.totalorder %s48_s20, %s969_s14  ;;  %p974_p8 = scmp.lt.s32.totalorder %s48_s20, %s48_s20 }
  0x4f   :  { %p975_p9 = scmp.lt.s32.totalorder %s973_s3, %s969_s14 }
  0x51   :  { %p976_p10 = por %p975_p9, %p974_p8 }
  0x53   :  { %p977_p11 = pnand %p976_p10, %p970_p7 }
  0x55   :  { %980 = shalt.err (!%p977_p11)
}
  0x56   :  { %50 = dma.hbm_to_vmem [thread:$0]  %s1254_s2, 16, %s48_s20, [#allocation6]  }
  0x57   :  { %s1066_s27 = smov [#allocation10]   ;;  %s1067_s16 = smov [#allocation13]  }
  0x58   :  { %s69_s15 = sshll.u32 %s1066_s27, 4  ;;  %s91_s17 = sshll.u32 %s1067_s16, 4  ;;  %s70_s15 = int_to_ptr.vmem [resolvable:$true] %s69_s15  ;;  %s92_s17 = int_to_ptr.vmem [resolvable:$true] %s91_s17 }
  0x59   :  { %s981_s22 = scalar_lea.hbm %s1256_s4, 16 }
  0x5a   :  { %p982_p12 = scmp.ne.s32.totalorder %s1256_s4, %s981_s22  ;;  %p985_p13 = scmp.lt.u32.totalorder %s981_s22, %s1256_s4 }
  0x5c   :  { %p987_p0 = pnand %p985_p13, %p982_p12 }
  0x5e   :  { %990 = shalt.err (!%p987_p0)
}
  0x5f   :  { %s991_s2 = scalar_lea.vmem %s70_s15, 16  ;;  %s995_s20 = scalar_lea.vmem %s70_s15, 32 }
  0x60   :  { %p992_p1 = scmp.ne.s32.totalorder %s70_s15, %s991_s2  ;;  %p996_p2 = scmp.lt.s32.totalorder %s70_s15, %s70_s15 }
  0x61   :  { %p997_p3 = scmp.lt.s32.totalorder %s995_s20, %s991_s2 }
  0x63   :  { %p998_p4 = por %p997_p3, %p996_p2 }
  0x65   :  { %p999_p5 = pnand %p998_p4, %p992_p1 }
  0x67   :  { %1002 = shalt.err (!%p999_p5)
}
  0x68   :  { %72 = dma.hbm_to_vmem [thread:$0]  %s1256_s4, 16, %s70_s15, [#allocation9]  }
  0x69   :  { %s1003_s30 = scalar_lea.hbm %s1258_s6, 16 }
  0x6a   :  { %p1004_p6 = scmp.ne.s32.totalorder %s1258_s6, %s1003_s30  ;;  %p1007_p7 = scmp.lt.u32.totalorder %s1003_s30, %s1258_s6 }
  0x6c   :  { %p1009_p8 = pnand %p1007_p7, %p1004_p6 }
  0x6e   :  { %1012 = shalt.err (!%p1009_p8)
}
  0x6f   :  { %s1013_s12 = scalar_lea.vmem %s92_s17, 16  ;;  %s1017_s13 = scalar_lea.vmem %s92_s17, 32 }
  0x70   :  { %p1014_p9 = scmp.ne.s32.totalorder %s92_s17, %s1013_s12  ;;  %p1018_p10 = scmp.lt.s32.totalorder %s92_s17, %s92_s17 }
  0x71   :  { %p1019_p11 = scmp.lt.s32.totalorder %s1017_s13, %s1013_s12 }
  0x73   :  { %p1020_p12 = por %p1019_p11, %p1018_p10 }
  0x75   :  { %p1021_p13 = pnand %p1020_p12, %p1014_p9 }
  0x77   :  { %1024 = shalt.err (!%p1021_p13)
}
  0x78   :  { %94 = dma.hbm_to_vmem [thread:$0]  %s1258_s6, 16, %s92_s17, [#allocation12]  }
  0x79   :  { %1047 = dma.done.wait [#allocation3], 1024  }
  0x7a   :  { %1048 = vsyncadd [#allocation3], 4294966272 }
  0x7b   :  { %1049 = dma.done.wait [#allocation6], 2064  }
  0x7c   :  { %1050 = vsyncadd [#allocation6], 4294965232 }
  0x7d   :  { %1051 = dma.done.wait [#allocation9], 1040  }
  0x7e   :  { %1052 = vsyncadd [#allocation9], 4294966256 }
  0x7f   :  { %1053 = dma.done.wait [#allocation12], 2064  }
  0x80   :  { %1054 = vsyncadd [#allocation12], 4294965232  ;;  %v843_v0 = vld [vmem:[#allocation5 + $0x40] sm:$0xff]   ;;  %v845_v2 = vld [vmem:[#allocation5 + $0x48] sm:$0xff]   ;;  %v1068_v27 = vmov 0.0|0.0   ;;  %vm1069_vm0 = vmmov 0  }
  0x81   :  { %v844_v1 = vld [vmem:[#allocation5] sm:$0xff]   ;;  %672 = vmatprep.subr.bf16.mxu0 %v843_v0  ;;  %v846_v3 = vld [vmem:[#allocation5 + $0x8] sm:$0xff]   ;;  %v847_v4 = vld [vmem:[#allocation5 + $0x50] sm:$0xff]   ;;  %792 = vmatprep.subr.bf16.mxu1 %v1068_v27  ;;  %v1070_v37 = vmov 0.0   ;;  %vm365_vm1 = vcmask 523264   ;;  %vm445_vm2 = vcmask 1041409  }
  0x82   :  { %673 = vmatpush3.bf16.msra.mxu0 %v844_v1  ;;  %v848_v5 = vld [vmem:[#allocation5 + $0x10] sm:$0xff]   ;;  %v849_v6 = vld [vmem:[#allocation5 + $0x58] sm:$0xff]   ;;  %v851_v8 = vld [vmem:[#allocation5 + $0x60] sm:$0xff]   ;;  %754 = vmatprep.mubr.msk.f32.mxu1 %vm1069_vm0, %v1070_v37  ;;  %vm447_vm3 = vcmask 1042434   ;;  %vm449_vm4 = vcmask 1043459   ;;  %vm451_vm5 = vcmask 1044484  }
  0x83   :  { %674 = vmatprep.subr.bf16.mxu0 %v845_v2  ;;  %v850_v7 = vld [vmem:[#allocation5 + $0x18] sm:$0xff]   ;;  %v852_v9 = vld [vmem:[#allocation5 + $0x20] sm:$0xff]   ;;  %v853_v10 = vld [vmem:[#allocation5 + $0x68] sm:$0xff]   ;;  %vm453_vm6 = vcmask 1045509   ;;  %vm455_vm7 = vcmask 1046534   ;;  %vm457_vm8 = vcmask 1047559  }
  0x84   :  { %v861_v11 = vld [vmem:[#allocation2 + $0x4] ss:$8 sps:$4 sm:$0xff]   ;;  %v855_v13 = vld [vmem:[#allocation5 + $0x70] sm:$0xff]   ;;  %v857_v15 = vld [vmem:[#allocation5 + $0x78] sm:$0xff]   ;;  %s1071_s6 = smov [#allocation14]  }
  0x85   :  { %v854_v12 = vld [vmem:[#allocation5 + $0x28] sm:$0xff]   ;;  %332 = vmatprep.mubr.bf16.mxu0 %v861_v11  ;;  %v856_v14 = vld [vmem:[#allocation5 + $0x30] sm:$0xff]   ;;  %v858_v16 = vld [vmem:[#allocation5 + $0x38] sm:$0xff]   ;;  %s632_s3 = sshll.u32 %s1071_s6, 4  ;;  %s633_s3 = int_to_ptr.vmem [resolvable:$true] %s632_s3 }
  0x86   :  { %675 = vmatpush3.bf16.msra.mxu0 %v846_v3  ;;  %v859_v17 = vld [vmem:[#allocation2] ss:$8 sps:$4 sm:$0xff]   ;;  %v862_v18 = vld [vmem:[#allocation2 + $0x14] ss:$8 sps:$4 sm:$0xff]   ;;  %v864_v19 = vld [vmem:[#allocation2 + $0x10] ss:$8 sps:$4 sm:$0xff]   ;;  %p1030_p1 = scmp.lt.s32.totalorder %s633_s3, %s633_s3 }
  0x87   :  { %676 = vmatprep.subr.bf16.mxu0 %v847_v4  ;;  %v865_v20 = vld [vmem:[#allocation2 + $0x24] ss:$8 sps:$4 sm:$0xff]   ;;  %v867_v21 = vld [vmem:[#allocation2 + $0x20] ss:$8 sps:$4 sm:$0xff]   ;;  %v868_v22 = vld [vmem:[#allocation2 + $0x34] ss:$8 sps:$4 sm:$0xff]  }
  0x88   :  { %v870_v23 = vld [vmem:[#allocation2 + $0x30] ss:$8 sps:$4 sm:$0xff]   ;;  %v422_v24 = vld [vmem:[#allocation8] sm:$0xff]  ;;  %v1212_v39 = vld [vmem:[#allocation7] ss:$0 sm:$0xff]  ;;  %s1025_s0 = scalar_lea.vmem %s633_s3, 128 }
  0x89   :  { %v423_v25 = vld [vmem:[#allocation8 + $0x8] sm:$0xff]  ;;  %v424_v28 = vld [vmem:[#allocation8 + $0x10] sm:$0xff]  ;;  %v425_v29 = vld [vmem:[#allocation8 + $0x18] sm:$0xff]  ;;  %p1026_p0 = scmp.ne.s32.totalorder %s633_s3, %s1025_s0  ;;  %p1031_p2 = scmp.lt.s32.totalorder %s1025_s0, %s1025_s0 }
  0x8a   :  { %677 = vmatpush3.bf16.msra.mxu0 %v848_v5  ;;  %v793_v26 = vpack.c.bf16 %v423_v25, %v422_v24  ;;  %v796_v30 = vpack.c.bf16 %v425_v29, %v424_v28  ;;  %v426_v31 = vld [vmem:[#allocation8 + $0x20] sm:$0xff]  ;;  %v427_v32 = vld [vmem:[#allocation8 + $0x28] sm:$0xff]  ;;  %v428_v34 = vld [vmem:[#allocation8 + $0x30] sm:$0xff] }
  0x8b   :  { %678 = vmatprep.subr.bf16.mxu0 %v849_v6  ;;  %v799_v33 = vpack.c.bf16 %v427_v32, %v426_v31  ;;  %v429_v35 = vld [vmem:[#allocation8 + $0x38] sm:$0xff]  ;;  %p1032_p3 = por %p1031_p2, %p1030_p1 }
  0x8c   :  { %794 = vmatpush3.bf16.msra.mxu1 %v793_v26  ;;  %v802_v36 = vpack.c.bf16 %v429_v35, %v428_v34 }
  0x8d   :  { %795 = vmatprep.subr.bf16.mxu1 %v1068_v27  ;;  %p1033_p4 = pnand %p1032_p3, %p1026_p0 }
  0x8e   :  { %679 = vmatpush3.bf16.msra.mxu0 %v850_v7 }
  0x8f   :  { %680 = vmatprep.subr.bf16.mxu0 %v851_v8 }
  0x90   :  { %797 = vmatpush3.bf16.msra.mxu1 %v796_v30 }
  0x91   :  { %798 = vmatprep.subr.bf16.mxu1 %v1068_v27 }
  0x92   :  { %681 = vmatpush3.bf16.msra.mxu0 %v852_v9 }
  0x93   :  { %682 = vmatprep.subr.bf16.mxu0 %v853_v10 }
  0x94   :  { %800 = vmatpush3.bf16.msra.mxu1 %v799_v33 }
  0x95   :  { %801 = vmatprep.subr.bf16.mxu1 %v1068_v27 }
  0x96   :  { %683 = vmatpush3.bf16.msra.mxu0 %v854_v12 }
  0x97   :  { %684 = vmatprep.subr.bf16.mxu0 %v855_v13 }
  0x98   :  { %803 = vmatpush3.bf16.msra.mxu1 %v802_v36 }
  0x99   :  { %804 = vmatprep.subr.bf16.mxu1 %v1068_v27 }
  0x9a   :  { %685 = vmatpush3.bf16.msra.mxu0 %v856_v14 }
  0x9b   :  { %686 = vmatprep.subr.bf16.mxu0 %v857_v15 }
  0x9e   :  { %687 = vmatpush3.bf16.msra.mxu0 %v858_v16 }
  0xa1   :  { %333 = vmatmul.mubr.bf16.vlgmr.msra.gmra.mrb[0].mxu0 %v859_v17 }
  0xa2   :  { %340 = vmatprep.mubr.bf16.mxu0 %v862_v18 }
  0xa9   :  { %341 = vmatmul.mubr.bf16.gmra.mrb[4].mxu0 %v864_v19 }
  0xaa   :  { %348 = vmatprep.mubr.bf16.mxu0 %v865_v20 }
  0xb1   :  { %349 = vmatmul.mubr.bf16.gmra.mrb[8].mxu0 %v867_v21 }
  0xb2   :  { %356 = vmatprep.mubr.bf16.mxu0 %v868_v22 }
  0xb9   :  { %357 = vmatmul.mubr.bf16.gmra.mrb[12].mxu0 %v870_v23 }
 0x174   :  { %v688_v38 = vpop.f32.mrb[0].mxu0 }
 0x175   :  { %v689_v40 = vpop.f32.mrb[1].mxu0 }
 0x176   :  { %v690_v41 = vadd.f32 %v689_v40, %v688_v38  ;;  %v691_v42 = vpop.f32.mrb[2].mxu0 }
 0x177   :  { %v692_v43 = vpop.f32.mrb[3].mxu0 }
 0x178   :  { %v335_v44 = vadd.f32 %v690_v41, %v1212_v39  ;;  %v693_v45 = vadd.f32 %v692_v43, %v691_v42 }
 0x17a   :  { %v366_v46 = vsel %vm365_vm1, %v335_v44, -inf  ;;  %v338_v47 = vadd.f32 %v693_v45, %v1212_v39 }
 0x17b   :  { %v367_v48 = vrot.slane %v366_v46, 4 }
 0x17c   :  { %v373_v49 = vsel %vm365_vm1, %v338_v47, -inf  ;;  %v694_v50 = vpop.f32.mrb[4].mxu0 }
 0x17d   :  { %v368_v51 = vmax.f32 %v366_v46, %v367_v48  ;;  %v374_v52 = vrot.slane %v373_v49, 4  ;;  %v695_v53 = vpop.f32.mrb[5].mxu0 }
 0x17e   :  { %v696_v54 = vadd.f32 %v695_v53, %v694_v50  ;;  %v697_v55 = vpop.f32.mrb[6].mxu0 }
 0x17f   :  { %v369_v56 = vrot.slane %v368_v51, 2  ;;  %v375_v57 = vmax.f32 %v373_v49, %v374_v52  ;;  %v698_v58 = vpop.f32.mrb[7].mxu0 }
 0x180   :  { %v343_v59 = vadd.f32 %v696_v54, %v1212_v39  ;;  %v699_v60 = vadd.f32 %v698_v58, %v697_v55 }
 0x181   :  { %v370_v61 = vmax.f32 %v368_v51, %v369_v56  ;;  %v376_v62 = vrot.slane %v375_v57, 2 }
 0x182   :  { %v380_v63 = vsel %vm365_vm1, %v343_v59, -inf  ;;  %v346_v0 = vadd.f32 %v699_v60, %v1212_v39 }
 0x183   :  { %v371_v1 = vrot.slane %v370_v61, 1  ;;  %v377_v2 = vmax.f32 %v375_v57, %v376_v62  ;;  %v381_v3 = vrot.slane %v380_v63, 4 }
 0x184   :  { %v387_v4 = vsel %vm365_vm1, %v346_v0, -inf  ;;  %v700_v5 = vpop.f32.mrb[8].mxu0 }
 0x185   :  { %v378_v6 = vrot.slane %v377_v2, 1  ;;  %v382_v7 = vmax.f32 %v380_v63, %v381_v3  ;;  %v388_v8 = vrot.slane %v387_v4, 4  ;;  %v701_v9 = vpop.f32.mrb[9].mxu0  ;;  %v372_v12 = vmax.f32 %v370_v61, %v371_v1  ;;  %v532_v3 = vld [vmem:[#allocation11] sm:$0xff] }
 0x186   :  { %v702_v10 = vadd.f32 %v701_v9, %v700_v5  ;;  %v703_v11 = vpop.f32.mrb[10].mxu0 }
 0x187   :  { %v379_v13 = vmax.f32 %v377_v2, %v378_v6  ;;  %v383_v14 = vrot.slane %v382_v7, 2  ;;  %v389_v15 = vmax.f32 %v387_v4, %v388_v8  ;;  %v704_v16 = vpop.f32.mrb[11].mxu0  ;;  %v533_v4 = vld [vmem:[#allocation11 + $0x8] sm:$0xff] }
 0x188   :  { %v351_v17 = vadd.f32 %v702_v10, %v1212_v39  ;;  %v705_v18 = vadd.f32 %v704_v16, %v703_v11  ;;  %v805_v9 = vpack.c.bf16 %v533_v4, %v532_v3  ;;  %v534_v10 = vld [vmem:[#allocation11 + $0x10] sm:$0xff]  ;;  %v535_v11 = vld [vmem:[#allocation11 + $0x18] sm:$0xff] }
 0x189   :  { %v446_v19 = vsel %vm445_vm2, %v379_v13, %v372_v12  ;;  %v384_v20 = vmax.f32 %v382_v7, %v383_v14  ;;  %v390_v21 = vrot.slane %v389_v15, 2  ;;  %v808_v13 = vpack.c.bf16 %v535_v11, %v534_v10  ;;  %v536_v14 = vld [vmem:[#allocation11 + $0x20] sm:$0xff] }
 0x18a   :  { %v394_v22 = vsel %vm365_vm1, %v351_v17, -inf  ;;  %v354_v23 = vadd.f32 %v705_v18, %v1212_v39  ;;  %v538_v17 = vld [vmem:[#allocation11 + $0x30] sm:$0xff]  ;;  %v539_v18 = vld [vmem:[#allocation11 + $0x38] sm:$0xff] }
 0x18b   :  { %v385_v24 = vrot.slane %v384_v20, 1  ;;  %v391_v25 = vmax.f32 %v389_v15, %v390_v21  ;;  %v395_v26 = vrot.slane %v394_v22, 4  ;;  %v537_v15 = vld [vmem:[#allocation11 + $0x28] sm:$0xff] }
 0x18c   :  { %v401_v28 = vsel %vm365_vm1, %v354_v23, -inf  ;;  %v706_v29 = vpop.f32.mrb[12].mxu0  ;;  %v811_v16 = vpack.c.bf16 %v537_v15, %v536_v14  ;;  %v541_v21 = vld [vmem:[#allocation11 + $0x48] sm:$0xff]  ;;  %v543_v23 = vld [vmem:[#allocation11 + $0x58] sm:$0xff] }
 0x18d   :  { %v386_v30 = vmax.f32 %v384_v20, %v385_v24  ;;  %v392_v31 = vrot.slane %v391_v25, 1  ;;  %v396_v32 = vmax.f32 %v394_v22, %v395_v26  ;;  %v402_v33 = vrot.slane %v401_v28, 4  ;;  %v707_v34 = vpop.f32.mrb[13].mxu0  ;;  %v540_v20 = vld [vmem:[#allocation11 + $0x40] sm:$0xff]  ;;  %v545_v26 = vld [vmem:[#allocation11 + $0x68] sm:$0xff] }
 0x18e   :  { %v708_v35 = vadd.f32 %v707_v34, %v706_v29  ;;  %v709_v36 = vpop.f32.mrb[14].mxu0  ;;  %v817_v22 = vpack.c.bf16 %v541_v21, %v540_v20  ;;  %v546_v29 = vld [vmem:[#allocation11 + $0x70] sm:$0xff] }
 0x18f   :  { %v448_v38 = vsel %vm447_vm3, %v386_v30, %v446_v19  ;;  %v393_v40 = vmax.f32 %v391_v25, %v392_v31  ;;  %v397_v41 = vrot.slane %v396_v32, 2  ;;  %v403_v42 = vmax.f32 %v401_v28, %v402_v33  ;;  %v710_v43 = vpop.f32.mrb[15].mxu0  ;;  %v544_v25 = vld [vmem:[#allocation11 + $0x60] sm:$0xff]  ;;  %v547_v30 = vld [vmem:[#allocation11 + $0x78] sm:$0xff] }
 0x190   :  { %v359_v44 = vadd.f32 %v708_v35, %v1212_v39  ;;  %v711_v45 = vadd.f32 %v710_v43, %v709_v36  ;;  %v814_v19 = vpack.c.bf16 %v539_v18, %v538_v17  ;;  %v823_v28 = vpack.c.bf16 %v545_v26, %v544_v25 }
 0x191   :  { %v398_v46 = vmax.f32 %v396_v32, %v397_v41  ;;  %v404_v47 = vrot.slane %v403_v42, 2  ;;  %v450_v48 = vsel %vm449_vm4, %v393_v40, %v448_v38  ;;  %v826_v31 = vpack.c.bf16 %v547_v30, %v546_v29  ;;  %v669_v32 = vld [vmem:[#allocation10] ss:$0 sm:$0xff]  ;;  %v671_v38 = vld [vmem:[#allocation13] ss:$0 sm:$0xff] }
 0x192   :  { %v408_v49 = vsel %vm365_vm1, %v359_v44, -inf  ;;  %v362_v50 = vadd.f32 %v711_v45, %v1212_v39 }
 0x193   :  { %v399_v51 = vrot.slane %v398_v46, 1  ;;  %v405_v52 = vmax.f32 %v403_v42, %v404_v47  ;;  %v409_v53 = vrot.slane %v408_v49, 4 }
 0x194   :  { %v415_v54 = vsel %vm365_vm1, %v362_v50, -inf }
 0x195   :  { %v400_v55 = vmax.f32 %v398_v46, %v399_v51  ;;  %v406_v56 = vrot.slane %v405_v52, 1  ;;  %v410_v57 = vmax.f32 %v408_v49, %v409_v53  ;;  %v416_v58 = vrot.slane %v415_v54, 4 }
 0x197   :  { %v407_v59 = vmax.f32 %v405_v52, %v406_v56  ;;  %v411_v60 = vrot.slane %v410_v57, 2  ;;  %v417_v61 = vmax.f32 %v415_v54, %v416_v58  ;;  %v452_v62 = vsel %vm451_vm5, %v400_v55, %v450_v48 }
 0x199   :  { %v412_v63 = vmax.f32 %v410_v57, %v411_v60  ;;  %v418_v0 = vrot.slane %v417_v61, 2  ;;  %v454_v1 = vsel %vm453_vm6, %v407_v59, %v452_v62 }
 0x19b   :  { %v413_v2 = vrot.slane %v412_v63, 1  ;;  %v419_v39 = vmax.f32 %v417_v61, %v418_v0 }
 0x19d   :  { %v414_v5 = vmax.f32 %v412_v63, %v413_v2  ;;  %v420_v6 = vrot.slane %v419_v39, 1 }
 0x19f   :  { %v421_v7 = vmax.f32 %v419_v39, %v420_v6  ;;  %v456_v8 = vsel %vm455_vm7, %v414_v5, %v454_v1 }
 0x1a1   :  { %v458_v12 = vsel %vm457_vm8, %v421_v7, %v456_v8 }
 0x1a2   :  { %755 = vmatmul.mubr.msk.f32.vlgmr.msra.gmra.mrb[0].mxu1 %vm365_vm1, %v458_v12 }
 0x1a3   :  { %806 = vmatpush3.bf16.msra.mxu1 %v805_v9  ;;  %789 = vmatprep.mubr.msk.f32.mxu1 %vm1069_vm0, %v1070_v37  ;;  %v542_v37 = vld [vmem:[#allocation11 + $0x50] sm:$0xff] }
 0x1a4   :  { %807 = vmatprep.subr.bf16.mxu1 %v1068_v27  ;;  %v820_v24 = vpack.c.bf16 %v543_v23, %v542_v37 }
 0x1a7   :  { %809 = vmatpush3.bf16.msra.mxu1 %v808_v13 }
 0x1a8   :  { %810 = vmatprep.subr.bf16.mxu1 %v1068_v27 }
 0x1ab   :  { %812 = vmatpush3.bf16.msra.mxu1 %v811_v16 }
 0x1ac   :  { %813 = vmatprep.subr.bf16.mxu1 %v1068_v27 }
 0x1af   :  { %815 = vmatpush3.bf16.msra.mxu1 %v814_v19 }
 0x1b0   :  { %816 = vmatprep.subr.bf16.mxu1 %v1068_v27 }
 0x1b3   :  { %818 = vmatpush3.bf16.msra.mxu1 %v817_v22 }
 0x1b4   :  { %819 = vmatprep.subr.bf16.mxu1 %v1068_v27 }
 0x1b7   :  { %821 = vmatpush3.bf16.msra.mxu1 %v820_v24 }
 0x1b8   :  { %822 = vmatprep.subr.bf16.mxu1 %v1068_v27 }
 0x1bb   :  { %824 = vmatpush3.bf16.msra.mxu1 %v823_v28 }
 0x1bc   :  { %825 = vmatprep.subr.bf16.mxu1 %v1068_v27 }
 0x1bf   :  { %827 = vmatpush3.bf16.msra.mxu1 %v826_v31 }
 0x275   :  { %v527_v33 = vpop.f32.mrb[0].mxu1 }
 0x276   :  { %v528_v34 = vadd.f32 %v669_v32, %v527_v33  ;;  %v756_v35 = vpop.f32.mrb[1].mxu1 }
 0x278   :  { %v531_v36 = vmax.f32 %v528_v34, 0.0 }
 0x27a   :  { %790 = vmatmul.mubr.f32.vlgmr.msra.gmra.mrb[2].mxu1 %v531_v36 }
 0x34d   :  { %v621_v40 = vpop.f32.mrb[2].mxu1 }
 0x34e   :  { %v622_v41 = vadd.f32 %v671_v38, %v621_v40  ;;  %v791_v42 = vpop.f32.mrb[3].mxu1 }
 0x350   :  { %625 = vst [vmem:[#allocation14] sm:$0xff] %v622_v41 }
 0x351   :  { %1036 = shalt.err (!%p1033_p4)
}
 0x352   :  { %s1037_s15 = scalar_lea.hbm %s1259_s7, 128 }
 0x353   :  { %p1038_p5 = scmp.ne.s32.totalorder %s1259_s7, %s1037_s15  ;;  %p1041_p6 = scmp.lt.u32.totalorder %s1037_s15, %s1259_s7 }
 0x355   :  { %p1043_p7 = pnand %p1041_p6, %p1038_p5 }
 0x357   :  { %1046 = shalt.err (!%p1043_p7)
}
 0x358   :  { %635 = dma.vmem_to_hbm [thread:$0]  %s633_s3, 128, %s1259_s7, [#allocation4]  }
 0x359   :  { %1055 = dma.done.wait [#allocation4], 128  }
 0x35a   :  { %1056 = vsyncadd [#allocation4], 4294967168 }
 0x35b   :  { %639 = vsyncpa [#allocation3], 1 }
 0x35c   :  { %640 = vsyncpa [#allocation6], 1 }
 0x35d   :  { %641 = vsyncpa [#allocation9], 1 }
 0x35e   :  { %642 = vsyncpa [#allocation12], 1 }
 0x35f   :  { %643 = vsyncpa [#allocation4], 1 }

</bundles_post_ra>
